<compile_context>
chip_gen: v7x
topology: tpu7x:2x2x1
jax: 0.10.0
libtpu: 0.0.40
codegen_flags: <defaults>
</compile_context>

<pallas_src>
import functools
import math

import jax
import jax.numpy as jnp
from jax.experimental import pallas as pl
from jax.experimental.pallas import tpu as pltpu


# ------------------------- tiling / spec helpers -------------------------

_VMEM_LIMIT_BYTES = 48 * 1024 * 1024   # > 16/32 MiB scoped defaults, < 64 MiB v7x physical
_VMEM_TILE_BUDGET = 40 * 1024 * 1024   # headroom used when auto-sizing KV tiles


def _sublane_align(dtype):
    """Sublane packing granularity: f32 -> 8, bf16 -> 16, int8/fp8 -> 32."""
    return max(8, 32 // jnp.dtype(dtype).itemsize)


def _pick_tile(dim, target, align):
    """Largest tile <= target that divides `dim` and is a multiple of `align`.
    Falls back to the full dim (always a legal block size)."""
    if dim <= target:
        return dim
    t = (target // align) * align
    while t >= align:
        if dim % t == 0:
            return t
        t -= align
    return dim


def _spec(block_shape, index_map, buffers=None):
    """BlockSpec, optionally with deeper pipelining for pure streaming inputs."""
    if buffers is not None and buffers > 2:
        try:
            return pl.BlockSpec(block_shape, index_map,
                                pipeline_mode=pl.Buffered(buffers))
        except Exception:  # older jax without pipeline_mode= support
            pass
    return pl.BlockSpec(block_shape, index_map)


# ------------------------- tiled matmul (wqkv / wo) -------------------------

def _matmul_kernel(x_ref, w_ref, o_ref, acc_ref):
    @pl.when(pl.program_id(2) == 0)
    def _init():
        acc_ref[...] = jnp.zeros(acc_ref.shape, acc_ref.dtype)

    acc_ref[...] += jnp.dot(x_ref[...], w_ref[...],
                            preferred_element_type=jnp.float32)

    @pl.when(pl.program_id(2) == pl.num_programs(2) - 1)
    def _done():
        o_ref[...] = acc_ref[...].astype(o_ref.dtype)


def linear(x2d, w, *, tm_target=256, tn_target=512, tk_target=1024, w_buffers=3):
    """y = x2d @ w, tiled for the MXU with a float32 VMEM accumulator.

    Large tn/tk tiles amortize the ~0.35 us/grid-step overhead (decode-regime M is
    tiny); the streamed weight tile is triple-buffered when the K axis has >= 3 tiles."""
    M, K = x2d.shape
    K2, N = w.shape
    assert K == K2
    sub = _sublane_align(x2d.dtype)
    tm = _pick_tile(M, tm_target, sub)
    tn = _pick_tile(N, tn_target, 128)
    tk = _pick_tile(K, tk_target, 128)
    grid = (M // tm, N // tn, K // tk)
    wb = w_buffers if grid[2] >= 3 else None
    return pl.pallas_call(
        _matmul_kernel,
        out_shape=jax.ShapeDtypeStruct((M, N), x2d.dtype),
        grid_spec=pltpu.PrefetchScalarGridSpec(
            num_scalar_prefetch=0,
            grid=grid,
            in_specs=[
                pl.BlockSpec((tm, tk), lambda i, j, k: (i, k)),
                _spec((tk, tn), lambda i, j, k: (k, j), buffers=wb),
            ],
            out_specs=pl.BlockSpec((tm, tn), lambda i, j, k: (i, j)),
            scratch_shapes=[pltpu.VMEM((tm, tn), jnp.float32)],
        ),
        compiler_params=pltpu.CompilerParams(
            dimension_semantics=("parallel", "parallel", "arbitrary"),
            vmem_limit_bytes=_VMEM_LIMIT_BYTES),
    )(x2d, w)


# ------------------------- flash attention kernel -------------------------

def _flash_attn_kernel(q_ref, k_ref, v_ref, o_ref, m_sc, l_sc, acc_sc, *, scale):
    kv = pl.program_id(3)

    @pl.when(kv == 0)
    def _init():
        m_sc[...] = jnp.full(m_sc.shape, -jnp.inf, dtype=m_sc.dtype)
        l_sc[...] = jnp.zeros(l_sc.shape, l_sc.dtype)
        acc_sc[...] = jnp.zeros(acc_sc.shape, acc_sc.dtype)

    # Fold the softmax scale into q: an (Hs,St,D) multiply instead of an
    # (Hs,St,Tt) multiply on the scores -> ~Tt/D x less VPU work per KV step.
    q = q_ref[0] * scale                               # (Hs, St, D), storage dtype
    k = k_ref[0]                                       # (Hs, Tt, D)
    v = v_ref[0]                                       # (Hs, Tt, D)

    # Batched over the head group on the MXU; f32 accumulation.
    s = jnp.einsum("hsd,htd->hst", q, k,
                   preferred_element_type=jnp.float32)            # (Hs, St, Tt) f32

    m_prev = m_sc[...]
    m_new = jnp.maximum(m_prev, jnp.max(s, axis=-1, keepdims=True))
    alpha = jnp.exp(m_prev - m_new)
    p = jnp.exp(s - m_new)                                         # f32 softmax math
    l_sc[...] = alpha * l_sc[...] + jnp.sum(p, axis=-1, keepdims=True)
    acc_sc[...] = alpha * acc_sc[...] + jnp.einsum(
        "hst,htd->hsd", p.astype(v.dtype), v,
        preferred_element_type=jnp.float32)
    m_sc[...] = m_new

    @pl.when(kv == pl.num_programs(3) - 1)
    def _done():
        inv_l = pl.reciprocal(l_sc[...], approx=True)   # EUP, replaces the divide
        o = acc_sc[...] * inv_l                          # (Hs, St, D) f32
        Hs, St, D = o.shape
        # Lane-dense store: heads of this group packed along the 128-wide feature axis.
        # TODO(synk): when D % 128 == 0, accumulating in (S,H,D) order would make this
        # a zero-cost reshape instead of a once-per-block transpose.
        o_ref[0] = jnp.transpose(o, (1, 0, 2)).reshape(St, Hs * D).astype(o_ref.dtype)


def _pick_head_groups(H, D):
    """Prefer 2 head groups (second 'parallel' grid axis -> both v7x TensorCores busy
    even when B is 1/odd); only legal when each group's output slab stays a multiple
    of 128 lanes."""
    if H % 2 == 0 and ((H // 2) * D) % 128 == 0:
        return 2
    return 1


def attention(q, k_cache, v_cache, *, kv_tile_target=1024, q_tile_target=256,
              kv_buffers=3):
    """q: (B,H,S,D), caches: (B,H,T,D) -> (B, S, H*D) (lane-dense, head-major).

    TODO(synk): attends over the entire cache with no length/causal mask (matches the
    original script's default flex_attention call); cache rows are read by batch
    position b, exactly as flex_attention(q, k_cache, v_cache) does in PyTorch."""
    B, H, S, D = q.shape
    T = k_cache.shape[2]
    itemsize = jnp.dtype(q.dtype).itemsize
    sub = _sublane_align(q.dtype)

    G = _pick_head_groups(H, D)
    Hs = H // G
    St = _pick_tile(S, q_tile_target, 8)
    Tt = _pick_tile(T, kv_tile_target, sub)

    # Keep buffered tiles + scratch under the VMEM budget (matters on v7x's 64 MiB).
    def _vmem_bytes(tt):
        q_b = 2 * Hs * St * D * itemsize
        kv_b = 2 * kv_buffers * Hs * tt * D * itemsize
        out_b = 2 * St * Hs * D * itemsize
        scr_b = Hs * St * (D + 2) * 4
        return q_b + kv_b + out_b + scr_b

    while _vmem_bytes(Tt) > _VMEM_TILE_BUDGET and Tt % 2 == 0 and (Tt // 2) % sub == 0:
        Tt //= 2

    kvb = kv_buffers if (T // Tt) >= 3 else None
    scale = 1.0 / math.sqrt(D)
    return pl.pallas_call(
        functools.partial(_flash_attn_kernel, scale=scale),
        out_shape=jax.ShapeDtypeStruct((B, S, H * D), q.dtype),
        grid_spec=pltpu.PrefetchScalarGridSpec(
            num_scalar_prefetch=0,
            grid=(B, G, S // St, T // Tt),
            in_specs=[
                pl.BlockSpec((1, Hs, St, D), lambda b, g, sq, t: (b, g, sq, 0)),  # q resident
                _spec((1, Hs, Tt, D), lambda b, g, sq, t: (b, g, t, 0), buffers=kvb),  # K tile
                _spec((1, Hs, Tt, D), lambda b, g, sq, t: (b, g, t, 0), buffers=kvb),  # V tile
            ],
            out_specs=pl.BlockSpec((1, St, Hs * D), lambda b, g, sq, t: (b, sq, g)),
            scratch_shapes=[
                pltpu.VMEM((Hs, St, 1), jnp.float32),   # running max m
                pltpu.VMEM((Hs, St, 1), jnp.float32),   # running denom l
                pltpu.VMEM((Hs, St, D), jnp.float32),   # running numerator
            ],
        ),
        compiler_params=pltpu.CompilerParams(
            dimension_semantics=("parallel", "parallel", "parallel", "arbitrary"),
            vmem_limit_bytes=_VMEM_LIMIT_BYTES),
    )(q, k_cache, v_cache)


# ------------------------- plain-JAX glue -------------------------

def precompute_freqs_cis(seq_len, n_elem, base=10000, dtype=jnp.bfloat16):
    freqs = 1.0 / (base ** (jnp.arange(0, n_elem, 2)[: n_elem // 2]
                            .astype(jnp.float32) / n_elem))
    t = jnp.arange(seq_len, dtype=jnp.float32)
    freqs = jnp.outer(t, freqs)
    cache = jnp.stack([jnp.cos(freqs), jnp.sin(freqs)], axis=-1)  # (seq, D//2, 2)
    return cache.astype(dtype)


def apply_rotary_emb(x, freqs_cis):
    # x: (B, S, H, D); freqs_cis: (B, S, D//2, 2); math in f32, storage dtype out.
    B, S, H, D = x.shape
    xf = x.astype(jnp.float32).reshape(B, S, H, D // 2, 2)
    fc = freqs_cis.astype(jnp.float32).reshape(B, S, 1, D // 2, 2)
    xo = jnp.stack(
        [xf[..., 0] * fc[..., 0] - xf[..., 1] * fc[..., 1],
         xf[..., 1] * fc[..., 0] + xf[..., 0] * fc[..., 1]],
        axis=-1,
    )
    return xo.reshape(B, S, H, D).astype(x.dtype)


def _forward_impl(wqkv, wo, freqs_cis, k_cache, v_cache, batch_idx, input_pos, x):
    B, S, F = x.shape
    H = k_cache.shape[1]
    D = k_cache.shape[3]

    # qkv projection (tiled Pallas matmul)
    qkv = linear(x.reshape(B * S, F), wqkv).reshape(B, S, 3 * F)
    q, k, v = jnp.split(qkv, 3, axis=-1)
    q = q.reshape(B, S, H, D)
    k = k.reshape(B, S, H, D)
    v = v.reshape(B, S, H, D)

    # rotary embeddings gathered at input_pos
    freqs = freqs_cis[input_pos]                       # (B, S, D//2, 2)
    q = apply_rotary_emb(q, freqs)
    k = apply_rotary_emb(k, freqs)

    # Small activation-sized transposes only (fused by XLA under jit); the big
    # KV cache itself is never transposed or copied.
    q_t = jnp.transpose(q, (0, 2, 1, 3))               # (B, H, S, D)
    k_t = jnp.transpose(k, (0, 2, 1, 3))
    v_t = jnp.transpose(v, (0, 2, 1, 3))

    # Scatter only the S new tokens into the donated caches (in-place under jit):
    #   cache[batch_idx[b], h, input_pos[b, s], :] = k_t[b, h, s, :]
    bi = batch_idx[:, None, None]
    hi = jnp.arange(H)[None, :, None]
    pi = input_pos[:, None, :]
    k_cache = k_cache.at[bi, hi, pi].set(k_t)
    v_cache = v_cache.at[bi, hi, pi].set(v_t)

    # flash attention over the full cache; output is already (B, S, H*D) lane-dense
    y = attention(q_t, k_cache, v_cache)
    # output projection (tiled Pallas matmul)
    y = linear(y.reshape(B * S, F), wo).reshape(B, S, F)
    return y, k_cache, v_cache


# donate the caches so the scatter is an in-place update, not a full-cache rewrite
_forward_jit = jax.jit(_forward_impl, donate_argnums=(3, 4))


class NonPagedAttentionLayer:
    def __init__(self, bsz, n_heads, max_seq_len, head_dim, dtype,
                 block_size=32768, key=None):
        if key is None:
            key = jax.random.PRNGKey(0)
        self.n_head = n_heads
        self.head_dim = head_dim
        total = n_heads * head_dim
        k1, k2, k3, k4 = jax.random.split(key, 4)
        # Deterministic synthetic parameters (nn.Linear weights, no bias).
        # Use bfloat16 for weights/activations/KV cache (MXU-native on v5e/v6e/v7x,
        # half the HBM traffic); the kernels accumulate in f32 regardless.
        self.wqkv = (jax.random.normal(k1, (total, 3 * total), jnp.float32)
                     * (1.0 / math.sqrt(total))).astype(dtype)
        self.wo = (jax.random.normal(k2, (total, total), jnp.float32)
                   * (1.0 / math.sqrt(total))).astype(dtype)
        self.k_cache = jax.random.normal(
            k3, (bsz, n_heads, max_seq_len, head_dim)).astype(dtype)
        self.v_cache = jax.random.normal(
            k4, (bsz, n_heads, max_seq_len, head_dim)).astype(dtype)
        self.freqs_cis = precompute_freqs_cis(block_size, head_dim, dtype=dtype)

    def forward(self, batch_idx, input_pos, x):
        y, self.k_cache, self.v_cache = _forward_jit(
            self.wqkv, self.wo, self.freqs_cis,
            self.k_cache, self.v_cache, batch_idx, input_pos, x)
        return y


# ------------------------- references for sanity -------------------------

def _ref_attention_flat(q, kc, vc):
    scale = 1.0 / math.sqrt(q.shape[-1])
    hp = jax.lax.Precision.HIGHEST
    s = jnp.einsum("bhsd,bhtd->bhst", q.astype(jnp.float32),
                   kc.astype(jnp.float32), precision=hp) * scale
    p = jax.nn.softmax(s, axis=-1)
    o = jnp.einsum("bhst,bhtd->bhsd", p, vc.astype(jnp.float32), precision=hp)
    B, H, S, D = q.shape
    return jnp.transpose(o, (0, 2, 1, 3)).reshape(B, S, H * D).astype(q.dtype)


def _close(a, b, rtol, atol):
    return bool(jnp.allclose(a.astype(jnp.float32), b.astype(jnp.float32),
                             rtol=rtol, atol=atol))


if __name__ == "__main__":
    B, H, D = 2, 4, 32          # head_dim = 32, total_head_dim = 128
    S, MAX_SEQ = 8, 64
    dtype = jnp.bfloat16        # bf16 storage everywhere; f32 only in accumulators
    # TODO(synk): D=32 lane-pads K/V/acc tiles 4x and underfills the MXU contraction;
    # prefer head_dim=128 for production layouts (the second sanity check below uses it).

    key = jax.random.PRNGKey(0)
    kx, kp = jax.random.split(key)

    layer = NonPagedAttentionLayer(B, H, MAX_SEQ, D, dtype, block_size=128,
                                   key=jax.random.PRNGKey(0))

    x = jax.random.normal(kx, (B, S, H * D)).astype(dtype)
    batch_idx = jnp.arange(B, dtype=jnp.int32)
    input_pos = jnp.tile(jnp.arange(S, dtype=jnp.int32), (B, 1))   # (B, S)

    y = layer.forward(batch_idx, input_pos, x)
    y = jax.block_until_ready(y)
    assert y.shape == (B, S, H * D)
    assert bool(jnp.all(jnp.isfinite(y.astype(jnp.float32))))

    # sanity 1: Pallas flash-attention kernel vs pure-JAX reference (D=32 config)
    kq, kk, kv = jax.random.split(kp, 3)
    qt = jax.random.normal(kq, (B, H, S, D)).astype(dtype)
    kt = jax.random.normal(kk, (B, H, MAX_SEQ, D)).astype(dtype)
    vt = jax.random.normal(kv, (B, H, MAX_SEQ, D)).astype(dtype)
    out_ref = _ref_attention_flat(qt, kt, vt)
    out_pl = jax.block_until_ready(attention(qt, kt, vt))                  # 1 KV tile
    assert _close(out_pl, out_ref, 5e-2, 5e-2)
    out_pl2 = jax.block_until_ready(attention(qt, kt, vt, kv_tile_target=32))  # 2 tiles
    assert _close(out_pl2, out_ref, 5e-2, 5e-2)

    # sanity 2: head-group split path (D=128, H=2 -> 2 'parallel' head groups)
    k2q, k2k, k2v = jax.random.split(kq, 3)
    q2 = jax.random.normal(k2q, (1, 2, 16, 128)).astype(dtype)
    kc2 = jax.random.normal(k2k, (1, 2, 64, 128)).astype(dtype)
    vc2 = jax.random.normal(k2v, (1, 2, 64, 128)).astype(dtype)
    out2 = jax.block_until_ready(attention(q2, kc2, vc2))
    ref2 = _ref_attention_flat(q2, kc2, vc2)
    assert _close(out2, ref2, 5e-2, 5e-2)

    # sanity 3: tiled Pallas matmul vs high-precision jnp.dot (exercises K accumulation)
    ka, kb = jax.random.split(k2q)
    a = jax.random.normal(ka, (32, 256)).astype(dtype)
    b = jax.random.normal(kb, (256, 384)).astype(dtype)
    out_mm = jax.block_until_ready(linear(a, b, tk_target=128))
    ref_mm = jnp.dot(a.astype(jnp.float32), b.astype(jnp.float32),
                     precision=jax.lax.Precision.HIGHEST).astype(dtype)
    assert _close(out_mm, ref_mm, 2e-2, 1e-1)

    print("KERNEL_OK")
</pallas_src>

<mosaic_0001>
module attributes {stable_mosaic.version = 11 : i64} {
  func.func @_matmul_kernel(%arg0: i32, %arg1: i32, %arg2: i32, %arg3: memref<16x128xbf16, #tpu.memory_space<vmem>>, %arg4: memref<128x384xbf16, #tpu.memory_space<vmem>>, %arg5: memref<16x384xbf16, #tpu.memory_space<vmem>>, %arg6: memref<16x384xf32, #tpu.memory_space<vmem>>) attributes {dimension_semantics = [#tpu.dimension_semantics<parallel>, #tpu.dimension_semantics<parallel>, #tpu.dimension_semantics<arbitrary>], iteration_bounds = array<i64: 1, 1, 1>, scalar_prefetch = 0 : i64, scratch_operands = 1 : i64, tpu.core_type = #tpu.core_type<tc>, window_params = [{transform_indices = @transform_0, window_bounds = array<i64: 16, 128>}, {transform_indices = @transform_1, window_bounds = array<i64: 128, 384>}, {transform_indices = @transform_2, window_bounds = array<i64: 16, 384>}]} {
    %c0_i32 = arith.constant 0 : i32
    %0 = arith.cmpi eq, %arg2, %c0_i32 : i32
    %1 = arith.extui %0 : i1 to i32
    %c0_i32_0 = arith.constant 0 : i32
    %2 = arith.cmpi ne, %1, %c0_i32_0 : i32
    scf.if %2 {
      %cst_10 = arith.constant 0.000000e+00 : f32
      %12 = vector.broadcast %cst_10 : f32 to vector<16x384xf32>
      %c0_11 = arith.constant 0 : index
      %c0_12 = arith.constant 0 : index
      %13 = vector.load %arg6[%c0_11, %c0_12] : memref<16x384xf32, #tpu.memory_space<vmem>>, vector<16x384xf32>
      tpu.vector_store %arg6[%c0_11, %c0_12], %12 {strides = array<i32>} : memref<16x384xf32, #tpu.memory_space<vmem>>, vector<16x384xf32>,
    } else {
    }
    %c0 = arith.constant 0 : index
    %c0_1 = arith.constant 0 : index
    %3 = vector.load %arg6[%c0, %c0_1] : memref<16x384xf32, #tpu.memory_space<vmem>>, vector<16x384xf32>
    %c0_2 = arith.constant 0 : index
    %c0_3 = arith.constant 0 : index
    %4 = vector.load %arg3[%c0_2, %c0_3] : memref<16x128xbf16, #tpu.memory_space<vmem>>, vector<16x128xbf16>
    %c0_4 = arith.constant 0 : index
    %c0_5 = arith.constant 0 : index
    %5 = vector.load %arg4[%c0_4, %c0_5] : memref<128x384xbf16, #tpu.memory_space<vmem>>, vector<128x384xbf16>
    %cst = arith.constant dense<0.000000e+00> : vector<16x384xf32>
    %6 = tpu.matmul %4, %5, %cst {dimension_numbers = #tpu.dot_dimension_numbers<[1], [0], [0], [1], [0, 0, 1, 1], [], []>} : vector<16x128xbf16>, vector<128x384xbf16>, vector<16x384xf32> -> vector<16x384xf32>
    %7 = arith.addf %3, %6 : vector<16x384xf32>
    %c0_6 = arith.constant 0 : index
    %c0_7 = arith.constant 0 : index
    %8 = vector.load %arg6[%c0_6, %c0_7] : memref<16x384xf32, #tpu.memory_space<vmem>>, vector<16x384xf32>
    tpu.vector_store %arg6[%c0_6, %c0_7], %7 {strides = array<i32>} : memref<16x384xf32, #tpu.memory_space<vmem>>, vector<16x384xf32>,
    %c0_i32_8 = arith.constant 0 : i32
    %9 = arith.cmpi eq, %arg2, %c0_i32_8 : i32
    %10 = arith.extui %9 : i1 to i32
    %c0_i32_9 = arith.constant 0 : i32
    %11 = arith.cmpi ne, %10, %c0_i32_9 : i32
    scf.if %11 {
      %c0_10 = arith.constant 0 : index
      %c0_11 = arith.constant 0 : index
      %12 = vector.load %arg6[%c0_10, %c0_11] : memref<16x384xf32, #tpu.memory_space<vmem>>, vector<16x384xf32>
      %13 = arith.truncf %12 : vector<16x384xf32> to vector<16x384xbf16>
      %c0_12 = arith.constant 0 : index
      %c0_13 = arith.constant 0 : index
      %14 = vector.load %arg5[%c0_12, %c0_13] : memref<16x384xbf16, #tpu.memory_space<vmem>>, vector<16x384xbf16>
      tpu.vector_store %arg5[%c0_12, %c0_13], %13 {strides = array<i32>} : memref<16x384xbf16, #tpu.memory_space<vmem>>, vector<16x384xbf16>,
    } else {
    }
    return
  }
  func.func @transform_0(%arg0: i32, %arg1: i32, %arg2: i32) -> (i32, i32) {
    %c0_i32 = arith.constant 0 : i32
    return %arg0, %arg2 : i32, i32
  }
  func.func @transform_1(%arg0: i32, %arg1: i32, %arg2: i32) -> (i32, i32) {
    %c0_i32 = arith.constant 0 : i32
    return %arg2, %arg1 : i32, i32
  }
  func.func @transform_2(%arg0: i32, %arg1: i32, %arg2: i32) -> (i32, i32) {
    %c0_i32 = arith.constant 0 : i32
    return %arg0, %arg1 : i32, i32
  }
}

module attributes {stable_mosaic.version = 11 : i64} {
  func.func @_flash_attn_kernel(%arg0: i32, %arg1: i32, %arg2: i32, %arg3: i32, %arg4: memref<1x4x8x32xbf16, #tpu.memory_space<vmem>>, %arg5: memref<1x4x64x32xbf16, #tpu.memory_space<vmem>>, %arg6: memref<1x4x64x32xbf16, #tpu.memory_space<vmem>>, %arg7: memref<1x8x128xbf16, #tpu.memory_space<vmem>>, %arg8: memref<4x8x1xf32, #tpu.memory_space<vmem>>, %arg9: memref<4x8x1xf32, #tpu.memory_space<vmem>>, %arg10: memref<4x8x32xf32, #tpu.memory_space<vmem>>) attributes {dimension_semantics = [#tpu.dimension_semantics<parallel>, #tpu.dimension_semantics<parallel>, #tpu.dimension_semantics<parallel>, #tpu.dimension_semantics<arbitrary>], iteration_bounds = array<i64: 2, 1, 1, 1>, scalar_prefetch = 0 : i64, scratch_operands = 3 : i64, tpu.core_type = #tpu.core_type<tc>, window_params = [{transform_indices = @transform_0, window_bounds = array<i64: 1, 4, 8, 32>}, {transform_indices = @transform_1, window_bounds = array<i64: 1, 4, 64, 32>}, {transform_indices = @transform_2, window_bounds = array<i64: 1, 4, 64, 32>}, {transform_indices = @transform_3, window_bounds = array<i64: 1, 8, 128>}]} {
    %c0_i32 = arith.constant 0 : i32
    %0 = arith.cmpi eq, %arg3, %c0_i32 : i32
    %1 = arith.extui %0 : i1 to i32
    %c0_i32_0 = arith.constant 0 : i32
    %2 = arith.cmpi ne, %1, %c0_i32_0 : i32
    scf.if %2 {
      %cst_36 = arith.constant 0xFF800000 : f32
      %38 = vector.broadcast %cst_36 : f32 to vector<4x8x1xf32>
      %c0_37 = arith.constant 0 : index
      %c0_38 = arith.constant 0 : index
      %c0_39 = arith.constant 0 : index
      %39 = vector.load %arg8[%c0_37, %c0_38, %c0_39] : memref<4x8x1xf32, #tpu.memory_space<vmem>>, vector<4x8x1xf32>
      tpu.vector_store %arg8[%c0_37, %c0_38, %c0_39], %38 {strides = array<i32>} : memref<4x8x1xf32, #tpu.memory_space<vmem>>, vector<4x8x1xf32>,
      %cst_40 = arith.constant 0.000000e+00 : f32
      %40 = vector.broadcast %cst_40 : f32 to vector<4x8x1xf32>
      %c0_41 = arith.constant 0 : index
      %c0_42 = arith.constant 0 : index
      %c0_43 = arith.constant 0 : index
      %41 = vector.load %arg9[%c0_41, %c0_42, %c0_43] : memref<4x8x1xf32, #tpu.memory_space<vmem>>, vector<4x8x1xf32>
      tpu.vector_store %arg9[%c0_41, %c0_42, %c0_43], %40 {strides = array<i32>} : memref<4x8x1xf32, #tpu.memory_space<vmem>>, vector<4x8x1xf32>,
      %cst_44 = arith.constant 0.000000e+00 : f32
      %42 = vector.broadcast %cst_44 : f32 to vector<4x8x32xf32>
      %c0_45 = arith.constant 0 : index
      %c0_46 = arith.constant 0 : index
      %c0_47 = arith.constant 0 : index
      %43 = vector.load %arg10[%c0_45, %c0_46, %c0_47] : memref<4x8x32xf32, #tpu.memory_space<vmem>>, vector<4x8x32xf32>
      tpu.vector_store %arg10[%c0_45, %c0_46, %c0_47], %42 {strides = array<i32>} : memref<4x8x32xf32, #tpu.memory_space<vmem>>, vector<4x8x32xf32>,
    } else {
    }
    %c0 = arith.constant 0 : index
    %c0_1 = arith.constant 0 : index
    %c0_2 = arith.constant 0 : index
    %c0_3 = arith.constant 0 : index
    %3 = vector.load %arg4[%c0, %c0_1, %c0_2, %c0_3] : memref<1x4x8x32xbf16, #tpu.memory_space<vmem>>, vector<1x4x8x32xbf16>
    %4 = vector.shape_cast %3 : vector<1x4x8x32xbf16> to vector<4x8x32xbf16>
    %cst = arith.constant 1.767580e-01 : bf16
    %5 = vector.broadcast %cst : bf16 to vector<4x8x32xbf16>
    %6 = arith.mulf %4, %5 : vector<4x8x32xbf16>
    %c0_4 = arith.constant 0 : index
    %c0_5 = arith.constant 0 : index
    %c0_6 = arith.constant 0 : index
    %c0_7 = arith.constant 0 : index
    %7 = vector.load %arg5[%c0_4, %c0_5, %c0_6, %c0_7] : memref<1x4x64x32xbf16, #tpu.memory_space<vmem>>, vector<1x4x64x32xbf16>
    %8 = vector.shape_cast %7 : vector<1x4x64x32xbf16> to vector<4x64x32xbf16>
    %c0_8 = arith.constant 0 : index
    %c0_9 = arith.constant 0 : index
    %c0_10 = arith.constant 0 : index
    %c0_11 = arith.constant 0 : index
    %9 = vector.load %arg6[%c0_8, %c0_9, %c0_10, %c0_11] : memref<1x4x64x32xbf16, #tpu.memory_space<vmem>>, vector<1x4x64x32xbf16>
    %10 = vector.shape_cast %9 : vector<1x4x64x32xbf16> to vector<4x64x32xbf16>
    "tpu.trace_start"() <{level = 10 : i32, message = "hsd,htd->hst"}> : () -> ()
    %cst_12 = arith.constant dense<0.000000e+00> : vector<4x8x64xf32>
    %11 = tpu.matmul %6, %8, %cst_12 {dimension_numbers = #tpu.dot_dimension_numbers<[2], [2], [1], [1], [0, 0, 0, 1, 1, 1], [0], [0]>} : vector<4x8x32xbf16>, vector<4x64x32xbf16>, vector<4x8x64xf32> -> vector<4x8x64xf32>
    "tpu.trace_stop"() : () -> ()
    %c0_13 = arith.constant 0 : index
    %c0_14 = arith.constant 0 : index
    %c0_15 = arith.constant 0 : index
    %12 = vector.load %arg8[%c0_13, %c0_14, %c0_15] : memref<4x8x1xf32, #tpu.memory_space<vmem>>, vector<4x8x1xf32>
    %cst_16 = arith.constant dense<0xFF800000> : vector<4x8xf32>
    %13 = vector.multi_reduction <maximumf>, %11, %cst_16 [2] : vector<4x8x64xf32> to vector<4x8xf32>
    %14 = vector.shape_cast %13 : vector<4x8xf32> to vector<4x8x1xf32>
    %15 = arith.maximumf %12, %14 : vector<4x8x1xf32>
    %16 = arith.subf %12, %15 : vector<4x8x1xf32>
    %17 = math.exp %16 : vector<4x8x1xf32>
    %18 = vector.broadcast %15 : vector<4x8x1xf32> to vector<4x8x64xf32>
    %19 = arith.subf %11, %18 : vector<4x8x64xf32>
    %20 = math.exp %19 : vector<4x8x64xf32>
    %c0_17 = arith.constant 0 : index
    %c0_18 = arith.constant 0 : index
    %c0_19 = arith.constant 0 : index
    %21 = vector.load %arg9[%c0_17, %c0_18, %c0_19] : memref<4x8x1xf32, #tpu.memory_space<vmem>>, vector<4x8x1xf32>
    %22 = arith.mulf %17, %21 : vector<4x8x1xf32>
    %cst_20 = arith.constant dense<0.000000e+00> : vector<4x8xf32>
    %23 = vector.multi_reduction <add>, %20, %cst_20 [2] : vector<4x8x64xf32> to vector<4x8xf32>
    %24 = vector.shape_cast %23 : vector<4x8xf32> to vector<4x8x1xf32>
    %25 = arith.addf %22, %24 : vector<4x8x1xf32>
    %c0_21 = arith.constant 0 : index
    %c0_22 = arith.constant 0 : index
    %c0_23 = arith.constant 0 : index
    %26 = vector.load %arg9[%c0_21, %c0_22, %c0_23] : memref<4x8x1xf32, #tpu.memory_space<vmem>>, vector<4x8x1xf32>
    tpu.vector_store %arg9[%c0_21, %c0_22, %c0_23], %25 {strides = array<i32>} : memref<4x8x1xf32, #tpu.memory_space<vmem>>, vector<4x8x1xf32>,
    %c0_24 = arith.constant 0 : index
    %c0_25 = arith.constant 0 : index
    %c0_26 = arith.constant 0 : index
    %27 = vector.load %arg10[%c0_24, %c0_25, %c0_26] : memref<4x8x32xf32, #tpu.memory_space<vmem>>, vector<4x8x32xf32>
    %28 = vector.broadcast %17 : vector<4x8x1xf32> to vector<4x8x32xf32>
    %29 = arith.mulf %28, %27 : vector<4x8x32xf32>
    %30 = arith.truncf %20 : vector<4x8x64xf32> to vector<4x8x64xbf16>
    "tpu.trace_start"() <{level = 10 : i32, message = "hst,htd->hsd"}> : () -> ()
    %cst_27 = arith.constant dense<0.000000e+00> : vector<4x8x32xf32>
    %31 = tpu.matmul %30, %10, %cst_27 {dimension_numbers = #tpu.dot_dimension_numbers<[2], [1], [1], [2], [0, 0, 0, 1, 1, 2], [0], [0]>} : vector<4x8x64xbf16>, vector<4x64x32xbf16>, vector<4x8x32xf32> -> vector<4x8x32xf32>
    "tpu.trace_stop"() : () -> ()
    %32 = arith.addf %29, %31 : vector<4x8x32xf32>
    %c0_28 = arith.constant 0 : index
    %c0_29 = arith.constant 0 : index
    %c0_30 = arith.constant 0 : index
    %33 = vector.load %arg10[%c0_28, %c0_29, %c0_30] : memref<4x8x32xf32, #tpu.memory_space<vmem>>, vector<4x8x32xf32>
    tpu.vector_store %arg10[%c0_28, %c0_29, %c0_30], %32 {strides = array<i32>} : memref<4x8x32xf32, #tpu.memory_space<vmem>>, vector<4x8x32xf32>,
    %c0_31 = arith.constant 0 : index
    %c0_32 = arith.constant 0 : index
    %c0_33 = arith.constant 0 : index
    %34 = vector.load %arg8[%c0_31, %c0_32, %c0_33] : memref<4x8x1xf32, #tpu.memory_space<vmem>>, vector<4x8x1xf32>
    tpu.vector_store %arg8[%c0_31, %c0_32, %c0_33], %15 {strides = array<i32>} : memref<4x8x1xf32, #tpu.memory_space<vmem>>, vector<4x8x1xf32>,
    %c0_i32_34 = arith.constant 0 : i32
    %35 = arith.cmpi eq, %arg3, %c0_i32_34 : i32
    %36 = arith.extui %35 : i1 to i32
    %c0_i32_35 = arith.constant 0 : i32
    %37 = arith.cmpi ne, %36, %c0_i32_35 : i32
    scf.if %37 {
      %c0_36 = arith.constant 0 : index
      %c0_37 = arith.constant 0 : index
      %c0_38 = arith.constant 0 : index
      %38 = vector.load %arg9[%c0_36, %c0_37, %c0_38] : memref<4x8x1xf32, #tpu.memory_space<vmem>>, vector<4x8x1xf32>
      %39 = tpu.reciprocal %38 {approx = true} : vector<4x8x1xf32> -> vector<4x8x1xf32>
      %c0_39 = arith.constant 0 : index
      %c0_40 = arith.constant 0 : index
      %c0_41 = arith.constant 0 : index
      %40 = vector.load %arg10[%c0_39, %c0_40, %c0_41] : memref<4x8x32xf32, #tpu.memory_space<vmem>>, vector<4x8x32xf32>
      %41 = vector.broadcast %39 : vector<4x8x1xf32> to vector<4x8x32xf32>
      %42 = arith.mulf %40, %41 : vector<4x8x32xf32>
      %43 = tpu.transpose %42, [1, 0, 2] : vector<4x8x32xf32> -> vector<8x4x32xf32>
      %44 = vector.shape_cast %43 : vector<8x4x32xf32> to vector<8x128xf32>
      %45 = arith.truncf %44 : vector<8x128xf32> to vector<8x128xbf16>
      %c0_42 = arith.constant 0 : index
      %c0_43 = arith.constant 0 : index
      %c0_44 = arith.constant 0 : index
      %46 = vector.load %arg7[%c0_42, %c0_43, %c0_44] : memref<1x8x128xbf16, #tpu.memory_space<vmem>>, vector<1x8x128xbf16>
      %47 = vector.shape_cast %46 : vector<1x8x128xbf16> to vector<8x128xbf16>
      %48 = vector.shape_cast %45 : vector<8x128xbf16> to vector<1x8x128xbf16>
      tpu.vector_store %arg7[%c0_42, %c0_43, %c0_44], %48 {strides = array<i32>} : memref<1x8x128xbf16, #tpu.memory_space<vmem>>, vector<1x8x128xbf16>,
    } else {
    }
    return
  }
  func.func @transform_0(%arg0: i32, %arg1: i32, %arg2: i32, %arg3: i32) -> (i32, i32, i32, i32) {
    %c0_i32 = arith.constant 0 : i32
    %c0_i32_0 = arith.constant 0 : i32
    return %arg0, %arg1, %arg2, %c0_i32 : i32, i32, i32, i32
  }
  func.func @transform_1(%arg0: i32, %arg1: i32, %arg2: i32, %arg3: i32) -> (i32, i32, i32, i32) {
    %c0_i32 = arith.constant 0 : i32
    %c0_i32_0 = arith.constant 0 : i32
    return %arg0, %arg1, %arg3, %c0_i32 : i32, i32, i32, i32
  }
  func.func @transform_2(%arg0: i32, %arg1: i32, %arg2: i32, %arg3: i32) -> (i32, i32, i32, i32) {
    %c0_i32 = arith.constant 0 : i32
    %c0_i32_0 = arith.constant 0 : i32
    return %arg0, %arg1, %arg3, %c0_i32 : i32, i32, i32, i32
  }
  func.func @transform_3(%arg0: i32, %arg1: i32, %arg2: i32, %arg3: i32) -> (i32, i32, i32) {
    %c0_i32 = arith.constant 0 : i32
    return %arg0, %arg2, %arg1 : i32, i32, i32
  }
}

module attributes {stable_mosaic.version = 11 : i64} {
  func.func @_matmul_kernel(%arg0: i32, %arg1: i32, %arg2: i32, %arg3: memref<16x128xbf16, #tpu.memory_space<vmem>>, %arg4: memref<128x128xbf16, #tpu.memory_space<vmem>>, %arg5: memref<16x128xbf16, #tpu.memory_space<vmem>>, %arg6: memref<16x128xf32, #tpu.memory_space<vmem>>) attributes {dimension_semantics = [#tpu.dimension_semantics<parallel>, #tpu.dimension_semantics<parallel>, #tpu.dimension_semantics<arbitrary>], iteration_bounds = array<i64: 1, 1, 1>, scalar_prefetch = 0 : i64, scratch_operands = 1 : i64, tpu.core_type = #tpu.core_type<tc>, window_params = [{transform_indices = @transform_0, window_bounds = array<i64: 16, 128>}, {transform_indices = @transform_1, window_bounds = array<i64: 128, 128>}, {transform_indices = @transform_2, window_bounds = array<i64: 16, 128>}]} {
    %c0_i32 = arith.constant 0 : i32
    %0 = arith.cmpi eq, %arg2, %c0_i32 : i32
    %1 = arith.extui %0 : i1 to i32
    %c0_i32_0 = arith.constant 0 : i32
    %2 = arith.cmpi ne, %1, %c0_i32_0 : i32
    scf.if %2 {
      %cst_10 = arith.constant 0.000000e+00 : f32
      %12 = vector.broadcast %cst_10 : f32 to vector<16x128xf32>
      %c0_11 = arith.constant 0 : index
      %c0_12 = arith.constant 0 : index
      %13 = vector.load %arg6[%c0_11, %c0_12] : memref<16x128xf32, #tpu.memory_space<vmem>>, vector<16x128xf32>
      tpu.vector_store %arg6[%c0_11, %c0_12], %12 {strides = array<i32>} : memref<16x128xf32, #tpu.memory_space<vmem>>, vector<16x128xf32>,
    } else {
    }
    %c0 = arith.constant 0 : index
    %c0_1 = arith.constant 0 : index
    %3 = vector.load %arg6[%c0, %c0_1] : memref<16x128xf32, #tpu.memory_space<vmem>>, vector<16x128xf32>
    %c0_2 = arith.constant 0 : index
    %c0_3 = arith.constant 0 : index
    %4 = vector.load %arg3[%c0_2, %c0_3] : memref<16x128xbf16, #tpu.memory_space<vmem>>, vector<16x128xbf16>
    %c0_4 = arith.constant 0 : index
    %c0_5 = arith.constant 0 : index
    %5 = vector.load %arg4[%c0_4, %c0_5] : memref<128x128xbf16, #tpu.memory_space<vmem>>, vector<128x128xbf16>
    %cst = arith.constant dense<0.000000e+00> : vector<16x128xf32>
    %6 = tpu.matmul %4, %5, %cst {dimension_numbers = #tpu.dot_dimension_numbers<[1], [0], [0], [1], [0, 0, 1, 1], [], []>} : vector<16x128xbf16>, vector<128x128xbf16>, vector<16x128xf32> -> vector<16x128xf32>
    %7 = arith.addf %3, %6 : vector<16x128xf32>
    %c0_6 = arith.constant 0 : index
    %c0_7 = arith.constant 0 : index
    %8 = vector.load %arg6[%c0_6, %c0_7] : memref<16x128xf32, #tpu.memory_space<vmem>>, vector<16x128xf32>
    tpu.vector_store %arg6[%c0_6, %c0_7], %7 {strides = array<i32>} : memref<16x128xf32, #tpu.memory_space<vmem>>, vector<16x128xf32>,
    %c0_i32_8 = arith.constant 0 : i32
    %9 = arith.cmpi eq, %arg2, %c0_i32_8 : i32
    %10 = arith.extui %9 : i1 to i32
    %c0_i32_9 = arith.constant 0 : i32
    %11 = arith.cmpi ne, %10, %c0_i32_9 : i32
    scf.if %11 {
      %c0_10 = arith.constant 0 : index
      %c0_11 = arith.constant 0 : index
      %12 = vector.load %arg6[%c0_10, %c0_11] : memref<16x128xf32, #tpu.memory_space<vmem>>, vector<16x128xf32>
      %13 = arith.truncf %12 : vector<16x128xf32> to vector<16x128xbf16>
      %c0_12 = arith.constant 0 : index
      %c0_13 = arith.constant 0 : index
      %14 = vector.load %arg5[%c0_12, %c0_13] : memref<16x128xbf16, #tpu.memory_space<vmem>>, vector<16x128xbf16>
      tpu.vector_store %arg5[%c0_12, %c0_13], %13 {strides = array<i32>} : memref<16x128xbf16, #tpu.memory_space<vmem>>, vector<16x128xbf16>,
    } else {
    }
    return
  }
  func.func @transform_0(%arg0: i32, %arg1: i32, %arg2: i32) -> (i32, i32) {
    %c0_i32 = arith.constant 0 : i32
    return %arg0, %arg2 : i32, i32
  }
  func.func @transform_1(%arg0: i32, %arg1: i32, %arg2: i32) -> (i32, i32) {
    %c0_i32 = arith.constant 0 : i32
    return %arg2, %arg1 : i32, i32
  }
  func.func @transform_2(%arg0: i32, %arg1: i32, %arg2: i32) -> (i32, i32) {
    %c0_i32 = arith.constant 0 : i32
    return %arg0, %arg1 : i32, i32
  }
}

</mosaic_0001>

<bundles_post_ra>
// kernel: _forward_impl.3
= control target key start
LH: loop header
LB: loop body
LE: loop exit
PB: predicated region body
PF: predicated region fallthrough
CT: control target
= control target key end

     0   :  { %7 = vsyncpa [#allocation4], 0  ;;  %s469_s9 = smov [#allocation3]   ;;  %s517_s0 = inlined_call_operand.vmem [shape: bf16[16,128], index: 0, kind: input, shape index: {}]   ;;  %s518_s1 = inlined_call_operand.hbm [shape: bf16[128,384], index: 1, kind: input, shape index: {}]   ;;  %s519_s2 = inlined_call_operand.vmem [shape: bf16[16,384], index: 2, kind: output, shape index: {}]  }
   0x1   :  { %s15_s10 = sshll.u32 %s469_s9, 4  ;;  %s445_s13 = scalar_lea.hbm %s518_s1, 3072  ;;  %s16_s10 = int_to_ptr.vmem [resolvable:$true] %s15_s10 }
   0x2   :  { %p446_p0 = scmp.ne.s32.totalorder %s518_s1, %s445_s13  ;;  %p449_p1 = scmp.lt.u32.totalorder %s445_s13, %s518_s1 }
   0x4   :  { %p451_p2 = pnand %p449_p1, %p446_p0 }
   0x6   :  { %454 = shalt.err (!%p451_p2)
}
   0x7   :  { %s455_s18 = scalar_lea.vmem %s16_s10, 3072  ;;  %p460_p4 = scmp.lt.s32.totalorder %s16_s10, %s16_s10 }
   0x8   :  { %p456_p3 = scmp.ne.s32.totalorder %s16_s10, %s455_s18  ;;  %p461_p5 = scmp.lt.s32.totalorder %s455_s18, %s455_s18 }
   0xa   :  { %p462_p6 = por %p461_p5, %p460_p4 }
   0xc   :  { %p463_p7 = pnand %p462_p6, %p456_p3 }
   0xe   :  { %466 = shalt.err (!%p463_p7)
}
   0xf   :  { %s470_s19 = smov 192   ;;  %s471_s20 = smov 12  }
  0x10   :  { %21 = dma.hbm_to_vmem [thread:$0]  %s518_s1, 3072, %s16_s10, [#allocation4], %s470_s19, %s470_s19, %s471_s20  }
  0x11   :  { %467 = dma.done.wait [#allocation4], 3072  }
  0x12   :  { %468 = vsyncadd [#allocation4], 4294964224  ;;  %v472_v0 = vmov 0.0   ;;  %vm473_vm0 = vmmov 0   ;;  %v474_v1 = vmov 0   ;;  %v444_v26 = vld [vmem:[%s517_s0] sm:$0xff]  }
  0x13   :  { %386 = vmatprep.subr.bf16.mxu1 %v472_v0  ;;  %402 = vmatprep.mubr.msk.bf16.mxu1 %vm473_vm0, %v472_v0  ;;  %v412_v2 = vld [vmem:[#allocation3 + $0x4] ss:$12 sps:$4 sm:$0xff]   ;;  %v414_v3 = vld [vmem:[#allocation3 + $0x8] ss:$12 sps:$4 sm:$0xff]   ;;  %v415_v4 = vld [vmem:[#allocation3] ss:$12 sps:$4 sm:$0xff]  }
  0x14   :  { %242 = vmatprep.mubr.bf16.mxu0 %v474_v1  ;;  %210 = vmatprep.subr.bf16.mxu0 %v412_v2  ;;  %v416_v5 = vld [vmem:[#allocation3 + $0x1c] ss:$12 sps:$4 sm:$0xff]   ;;  %v418_v6 = vld [vmem:[#allocation3 + $0x20] ss:$12 sps:$4 sm:$0xff]   ;;  %v419_v7 = vld [vmem:[#allocation3 + $0x18] ss:$12 sps:$4 sm:$0xff]  }
  0x15   :  { %387 = vmatpush3.bf16.msra.mxu1 %v414_v3  ;;  %211 = vmatpush1.bf16.msra.mxu0 %v415_v4  ;;  %v420_v8 = vld [vmem:[#allocation3 + $0x34] ss:$12 sps:$4 sm:$0xff]   ;;  %v422_v9 = vld [vmem:[#allocation3 + $0x38] ss:$12 sps:$4 sm:$0xff]   ;;  %v423_v10 = vld [vmem:[#allocation3 + $0x30] ss:$12 sps:$4 sm:$0xff]  }
  0x16   :  { %388 = vmatprep.subr.bf16.mxu1 %v472_v0  ;;  %212 = vmatprep.subr.bf16.mxu0 %v416_v5  ;;  %v424_v11 = vld [vmem:[#allocation3 + $0x4c] ss:$12 sps:$4 sm:$0xff]   ;;  %v426_v12 = vld [vmem:[#allocation3 + $0x50] ss:$12 sps:$4 sm:$0xff]   ;;  %v427_v13 = vld [vmem:[#allocation3 + $0x48] ss:$12 sps:$4 sm:$0xff]  }
  0x17   :  { %v428_v14 = vld [vmem:[#allocation3 + $0x64] ss:$12 sps:$4 sm:$0xff]   ;;  %v430_v15 = vld [vmem:[#allocation3 + $0x68] ss:$12 sps:$4 sm:$0xff]   ;;  %v431_v16 = vld [vmem:[#allocation3 + $0x60] ss:$12 sps:$4 sm:$0xff]  }
  0x18   :  { %v432_v17 = vld [vmem:[#allocation3 + $0x7c] ss:$12 sps:$4 sm:$0xff]   ;;  %v434_v18 = vld [vmem:[#allocation3 + $0x80] ss:$12 sps:$4 sm:$0xff]   ;;  %v435_v19 = vld [vmem:[#allocation3 + $0x78] ss:$12 sps:$4 sm:$0xff]  }
  0x19   :  { %389 = vmatpush3.bf16.msra.mxu1 %v418_v6  ;;  %213 = vmatpush1.bf16.msra.mxu0 %v419_v7  ;;  %v436_v20 = vld [vmem:[#allocation3 + $0x94] ss:$12 sps:$4 sm:$0xff]   ;;  %v438_v21 = vld [vmem:[#allocation3 + $0x98] ss:$12 sps:$4 sm:$0xff]   ;;  %v439_v22 = vld [vmem:[#allocation3 + $0x90] ss:$12 sps:$4 sm:$0xff]  }
  0x1a   :  { %390 = vmatprep.subr.bf16.mxu1 %v472_v0  ;;  %214 = vmatprep.subr.bf16.mxu0 %v420_v8  ;;  %v440_v23 = vld [vmem:[#allocation3 + $0xac] ss:$12 sps:$4 sm:$0xff]   ;;  %v442_v24 = vld [vmem:[#allocation3 + $0xb0] ss:$12 sps:$4 sm:$0xff]   ;;  %v443_v25 = vld [vmem:[#allocation3 + $0xa8] ss:$12 sps:$4 sm:$0xff]  }
  0x1d   :  { %391 = vmatpush3.bf16.msra.mxu1 %v422_v9  ;;  %215 = vmatpush1.bf16.msra.mxu0 %v423_v10 }
  0x1e   :  { %392 = vmatprep.subr.bf16.mxu1 %v472_v0  ;;  %216 = vmatprep.subr.bf16.mxu0 %v424_v11 }
  0x21   :  { %393 = vmatpush3.bf16.msra.mxu1 %v426_v12  ;;  %217 = vmatpush1.bf16.msra.mxu0 %v427_v13 }
  0x22   :  { %394 = vmatprep.subr.bf16.mxu1 %v472_v0  ;;  %218 = vmatprep.subr.bf16.mxu0 %v428_v14 }
  0x25   :  { %395 = vmatpush3.bf16.msra.mxu1 %v430_v15  ;;  %219 = vmatpush1.bf16.msra.mxu0 %v431_v16 }
  0x26   :  { %396 = vmatprep.subr.bf16.mxu1 %v472_v0  ;;  %220 = vmatprep.subr.bf16.mxu0 %v432_v17 }
  0x29   :  { %397 = vmatpush3.bf16.msra.mxu1 %v434_v18  ;;  %221 = vmatpush1.bf16.msra.mxu0 %v435_v19 }
  0x2a   :  { %398 = vmatprep.subr.bf16.mxu1 %v472_v0  ;;  %222 = vmatprep.subr.bf16.mxu0 %v436_v20 }
  0x2d   :  { %399 = vmatpush3.bf16.msra.mxu1 %v438_v21  ;;  %223 = vmatpush1.bf16.msra.mxu0 %v439_v22 }
  0x2e   :  { %400 = vmatprep.subr.bf16.mxu1 %v472_v0  ;;  %224 = vmatprep.subr.bf16.mxu0 %v440_v23 }
  0x31   :  { %401 = vmatpush3.bf16.msra.mxu1 %v442_v24  ;;  %225 = vmatpush1.bf16.msra.mxu0 %v443_v25 }
  0x34   :  { %403 = vmatmul.mubr.bf16.vlgmr.msra.gmra.mrb[0].mxu1 %v444_v26  ;;  %243 = vmatmul.mubr.bf16.vlgmr.msra.gmra.mrb[0].mxu0 %v444_v26 }
 0x107   :  { %v287_v27 = vpop.f32.mrb[0].mxu1  ;;  %v244_v29 = vpop.f32.mrb[0].mxu0 }
 0x108   :  { %v374_v28 = vpack.c.bf16 %v287_v27, %v287_v27  ;;  %v404_v30 = vpop.f32.mrb[1].mxu1  ;;  %v246_v31 = vpop.f32.mrb[1].mxu0 }
 0x109   :  { %v290_v32 = vpop.f32.mrb[2].mxu1  ;;  %v373_v33 = vpack.c.bf16 %v246_v31, %v244_v29  ;;  %v248_v35 = vpop.f32.mrb[2].mxu0 }
 0x10a   :  { %336 = vst [vmem:[%s519_s2 + $0x8] sm:$0xf] %v374_v28  ;;  %v376_v34 = vpack.c.bf16 %v290_v32, %v290_v32  ;;  %v405_v36 = vpop.f32.mrb[3].mxu1  ;;  %v250_v37 = vpop.f32.mrb[3].mxu0 }
 0x10b   :  { %335 = vst [vmem:[%s519_s2] sm:$0xff] %v373_v33  ;;  %v375_v38 = vpack.c.bf16 %v250_v37, %v248_v35 }
 0x10c   :  { %338 = vst [vmem:[%s519_s2 + $0x14] sm:$0xf] %v376_v34 }
 0x10d   :  { %337 = vst [vmem:[%s519_s2 + $0xc] sm:$0xff] %v375_v38 }
 0x10e   :  { %343 = vsyncpa [#allocation4], 1 }

// kernel: _forward_impl.5
= control target key start
LH: loop header
LB: loop body
LE: loop exit
PB: predicated region body
PF: predicated region fallthrough
CT: control target
= control target key end

     0   :  { %v254_v1 = vmov 0.0   ;;  %vm255_vm0 = vmmov 0   ;;  %s313_s0 = inlined_call_operand.vmem [shape: bf16[16,128], index: 0, kind: input, shape index: {}]   ;;  %s314_s1 = inlined_call_operand.vmem [shape: bf16[128,128], index: 1, kind: input, shape index: {}]   ;;  %s315_s2 = inlined_call_operand.hbm [shape: bf16[16,128], index: 2, kind: output, shape index: {}]  }
   0x1   :  { %v221_v0 = vld [vmem:[%s314_s1] sm:$0xff]   ;;  %196 = vmatprep.subr.bf16.mxu0 %v254_v1  ;;  %v222_v2 = vld [vmem:[%s314_s1 + $0x8] sm:$0xff]   ;;  %212 = vmatprep.mubr.msk.bf16.mxu0 %vm255_vm0, %v254_v1  ;;  %v223_v3 = vld [vmem:[%s314_s1 + $0x10] sm:$0xff]  }
   0x2   :  { %197 = vmatpush3.bf16.msra.mxu0 %v221_v0 }
   0x3   :  { %198 = vmatprep.subr.bf16.mxu0 %v254_v1 }
   0x6   :  { %199 = vmatpush3.bf16.msra.mxu0 %v222_v2 }
   0x7   :  { %200 = vmatprep.subr.bf16.mxu0 %v254_v1 }
   0x8   :  { %7 = vsyncpa [#allocation4], 0  ;;  %v224_v4 = vld [vmem:[%s314_s1 + $0x18] sm:$0xff]   ;;  %v225_v5 = vld [vmem:[%s314_s1 + $0x20] sm:$0xff]   ;;  %s256_s27 = smov [#allocation3]  }
   0x9   :  { %v226_v6 = vld [vmem:[%s314_s1 + $0x28] sm:$0xff]   ;;  %v227_v7 = vld [vmem:[%s314_s1 + $0x30] sm:$0xff]   ;;  %v228_v8 = vld [vmem:[%s314_s1 + $0x38] sm:$0xff]   ;;  %s158_s28 = sshll.u32 %s256_s27, 4  ;;  %s159_s28 = int_to_ptr.vmem [resolvable:$true] %s158_s28 }
   0xa   :  { %201 = vmatpush3.bf16.msra.mxu0 %v223_v3  ;;  %v229_v9 = vld [vmem:[%s313_s0] sm:$0xff]   ;;  %s230_s29 = scalar_lea.vmem %s159_s28, 128  ;;  %p235_p1 = scmp.lt.s32.totalorder %s159_s28, %s159_s28 }
   0xb   :  { %202 = vmatprep.subr.bf16.mxu0 %v254_v1  ;;  %p231_p0 = scmp.ne.s32.totalorder %s159_s28, %s230_s29  ;;  %p236_p2 = scmp.lt.s32.totalorder %s230_s29, %s230_s29 }
   0xd   :  { %p237_p3 = por %p236_p2, %p235_p1 }
   0xe   :  { %203 = vmatpush3.bf16.msra.mxu0 %v224_v4 }
   0xf   :  { %204 = vmatprep.subr.bf16.mxu0 %v254_v1  ;;  %p238_p4 = pnand %p237_p3, %p231_p0 }
  0x12   :  { %205 = vmatpush3.bf16.msra.mxu0 %v225_v5 }
  0x13   :  { %206 = vmatprep.subr.bf16.mxu0 %v254_v1 }
  0x16   :  { %207 = vmatpush3.bf16.msra.mxu0 %v226_v6 }
  0x17   :  { %208 = vmatprep.subr.bf16.mxu0 %v254_v1 }
  0x1a   :  { %209 = vmatpush3.bf16.msra.mxu0 %v227_v7 }
  0x1b   :  { %210 = vmatprep.subr.bf16.mxu0 %v254_v1 }
  0x1e   :  { %211 = vmatpush3.bf16.msra.mxu0 %v228_v8 }
  0x21   :  { %213 = vmatmul.mubr.bf16.vlgmr.msra.gmra.mrb[0].mxu0 %v229_v9 }
  0xf4   :  { %v127_v10 = vpop.f32.mrb[0].mxu0 }
  0xf5   :  { %v214_v11 = vpop.f32.mrb[1].mxu0 }
  0xf6   :  { %v130_v12 = vpop.f32.mrb[2].mxu0 }
  0xf7   :  { %v185_v13 = vpack.c.bf16 %v130_v12, %v127_v10  ;;  %v215_v14 = vpop.f32.mrb[3].mxu0 }
  0xf9   :  { %186 = vst [vmem:[#allocation3] sm:$0xff] %v185_v13  }
  0xfa   :  { %241 = shalt.err (!%p238_p4)
}
  0xfb   :  { %s242_s30 = scalar_lea.hbm %s315_s2, 128 }
  0xfc   :  { %p243_p5 = scmp.ne.s32.totalorder %s315_s2, %s242_s30  ;;  %p246_p6 = scmp.lt.u32.totalorder %s242_s30, %s315_s2 }
  0xfe   :  { %p248_p7 = pnand %p246_p6, %p243_p5 }
 0x100   :  { %251 = shalt.err (!%p248_p7)
}
 0x101   :  { %s257_s7 = smov 64   ;;  %s258_s8 = smov 4  }
 0x102   :  { %164 = dma.vmem_to_hbm [thread:$0]  %s159_s28, 128, %s315_s2, [#allocation4], %s257_s7, %s257_s7, %s258_s8  }
 0x103   :  { %252 = dma.done.wait [#allocation4], 128  }
 0x104   :  { %253 = vsyncadd [#allocation4], 4294967168 }
 0x105   :  { %168 = vsyncpa [#allocation4], 1 }

// kernel: _forward_impl.4
= control target key start
LH: loop header
LB: loop body
LE: loop exit
PB: predicated region body
PF: predicated region fallthrough
CT: control target
= control target key end

     0   :  { %s1823_s12 = smov 0   ;;  %s1825_s13 = smov 0   ;;  %s2087_s0 = inlined_call_operand.vmem [shape: bf16[2,4,8,32], index: 0, kind: input, shape index: {}]   ;;  %s2088_s1 = inlined_call_operand.vmem [shape: bf16[2,4,64,32], index: 1, kind: input, shape index: {}]   ;;  %s2089_s2 = inlined_call_operand.vmem [shape: bf16[2,4,64,32], index: 2, kind: input, shape index: {}]   ;;  %s2090_s3 = inlined_call_operand.vmem [shape: bf16[2,8,128], index: 3, kind: output, shape index: {}]  }
   0x1   :  { %s1827_s14 = smov 0  }
   0x2 LB: > { %s39_s15 = sadd.s32 1, %s1788_s13  ;;  %p1488_p0 = scmp.ge.s32.totalorder %s1792_s14, 1  ;;  %s1792_s14 = sphi %s1827_s14, %s13_s14   ;;  %s1788_s13 = sphi %s1825_s13, %s2092_s13   ;;  %s1784_s12 = sphi %s1823_s12, %s2091_s12  }
   0x3   : > { %p41_p1 = scmp.ge.s32.totalorder %s39_s15, 2  ;;  %p229_p2 = scmp.lt.s32.totalorder %s1792_s14, 3 }
   0x5   : > { %s2094_s15 = smov (%p41_p1, %s39_s15), 0  ;;  %p230_p3 = pnand %p1488_p0, %p229_p2 }
   0x6   : > { %p294_p4 = scmp.lt.s32.totalorder (!%p230_p3), %s1784_s12, 1  ;;  %vm363_vm0 = vcmask (!%p230_p3), 261120   ;;  %v1794_v0 = vmov (!%p230_p3), 0.0   ;;  %vm1795_vm1 = vmmov (!%p230_p3), 0   ;;  %vm354_vm2 = vcmask (!%p230_p3), 7168   ;;  %s1800_s27 = smov (!%p230_p3), 64  }
   0x7   : > { %233 = sbr.rel (%p230_p3) target bundleno = 1021 (0x3fd), region = 32  ;;  %1583 = vmatprep.subr.bf16.mxu0 (!%p230_p3), %v1794_v0  ;;  %364 = vst.msk [vmem:[#allocation4] sm:$0xff] (!%p230_p3), %vm363_vm0, %v1794_v0  ;;  %365 = vst.msk [vmem:[#allocation4 + $0x8] sm:$0xff] (!%p230_p3), %vm363_vm0, %v1794_v0  ;;  %1595 = vmatprep.subr.bf16.mxu1 (!%p230_p3), %v1794_v0  ;;  %v1796_v41 = vmov (!%p230_p3), -inf   ;;  %vm745_vm3 = vcmask (!%p230_p3), 523264   ;;  %v1797_v52 = vmov (!%p230_p3), 0  }
   0x8   : > { %366 = vst.msk [vmem:[#allocation4 + $0x10] sm:$0xff] (!%p230_p3), %vm363_vm0, %v1794_v0  ;;  %367 = vst.msk [vmem:[#allocation4 + $0x18] sm:$0xff] (!%p230_p3), %vm363_vm0, %v1794_v0  ;;  %1591 = vmatprep.mubr.msk.bf16.mxu0 (!%p230_p3), %vm1795_vm1, %v1794_v0  ;;  %1603 = vmatprep.mubr.msk.bf16.mxu1 (!%p230_p3), %vm1795_vm1, %v1794_v0  ;;  %s1801_s28 = smov (!%p230_p3), 32   ;;  %s1802_s29 = smov (!%p230_p3), 96   ;;  %vm1336_vm4 = vcmask (!%p230_p3), 785408  }
   0x9   : > { %355 = vst.msk [vmem:[#allocation2] sm:$0xff] (!%p230_p3), %vm354_vm2, %v1796_v41  ;;  %356 = vst.msk [vmem:[#allocation2 + $0x8] sm:$0xff] (!%p230_p3), %vm354_vm2, %v1796_v41  ;;  %1712 = vset.pattern.permute.xlu0 (!%p230_p3), %v1797_v52  ;;  %1713 = vset.pattern.permute.xlu1 (!%p230_p3), %v1797_v52 }
   0xa   : > { %357 = vst.msk [vmem:[#allocation2 + $0x10] sm:$0xff] (!%p230_p3), %vm354_vm2, %v1796_v41  ;;  %358 = vst.msk [vmem:[#allocation2 + $0x18] sm:$0xff] (!%p230_p3), %vm354_vm2, %v1796_v41 }
   0xb   : > { %359 = vst.msk [vmem:[#allocation3] sm:$0xff] (!%p230_p3), %vm354_vm2, %v1794_v0  ;;  %360 = vst.msk [vmem:[#allocation3 + $0x8] sm:$0xff] (!%p230_p3), %vm354_vm2, %v1794_v0 }
   0xc   : > { %361 = vst.msk [vmem:[#allocation3 + $0x10] sm:$0xff] (!%p230_p3), %vm354_vm2, %v1794_v0  ;;  %362 = vst.msk [vmem:[#allocation3 + $0x18] sm:$0xff] (!%p230_p3), %vm354_vm2, %v1794_v0 }
   0xe   : > { %s2096_s12 = smov (!%p294_p4, %s1784_s12), 1 }
   0xf   : > { %s1541_s16 = sshll.u32 %s2096_s12, 7  ;;  %s1540_s23 = sshll.u32 %s2096_s12, 4 }
  0x10   : > { %s1861_s19 = scalar_lea.vmem %s2088_s1, %s1541_s16  ;;  %s1883_s22 = scalar_lea.vmem %s2089_s2, %s1541_s16  ;;  %v1966_v63 = vld [vmem:[#allocation2] sm:$0xff] }
  0x11   : > { %v1714_v1 = vld [vmem:[%s1861_s19] sm:$0xff]   ;;  %v1716_v5 = vld [vmem:[%s1861_s19 + $0x8] sm:$0xff]   ;;  %v1718_v9 = vld [vmem:[%s1861_s19 + $0x10] sm:$0xff]   ;;  %s1894_s26 = scalar_lea.vmem %s2087_s0, %s1540_s23  ;;  %s1495_s30 = sshll.u32 %s2096_s12, 2 }
  0x12   : > { %v1715_v2 = vld [vmem:[%s1861_s19 + $0x20] sm:$0xff]   ;;  %v465_v3 = vsel %vm363_vm0, %v1714_v1, 0  ;;  %v1717_v6 = vld [vmem:[%s1861_s19 + $0x28] sm:$0xff]   ;;  %v468_v7 = vsel %vm363_vm0, %v1716_v5, 0  ;;  %v1719_v10 = vld [vmem:[%s1861_s19 + $0x30] sm:$0xff]   ;;  %v471_v13 = vsel %vm363_vm0, %v1718_v9, 0  ;;  %s347_s6 = scalar_lea.vmem %s2090_s3, %s1495_s30 }
  0x13   : > { %1584 = vmatpush3.bf16.xpose.msra.mxu0 %v465_v3  ;;  %v540_v4 = vsel %vm363_vm0, %v1715_v2, 0  ;;  %v543_v8 = vsel %vm363_vm0, %v1717_v6, 0  ;;  %v1720_v11 = vld [vmem:[%s1861_s19 + $0x18] sm:$0xff]   ;;  %v546_v14 = vsel %vm363_vm0, %v1719_v10, 0  ;;  %v368_v17 = vld [vmem:[%s1894_s26] sm:$0xf] }
  0x14   : > { %1596 = vmatpush3.bf16.xpose.msra.mxu1 %v540_v4  ;;  %1585 = vmatprep.subr.bf16.mxu0 %v1794_v0  ;;  %v1721_v12 = vld [vmem:[%s1861_s19 + $0x38] sm:$0xff]   ;;  %v474_v15 = vsel %vm363_vm0, %v1720_v11, 0  ;;  %v1722_v18 = vld [vmem:[%s1861_s19 + $0x40] sm:$0xff]   ;;  %v372_v21 = vmul.bf16 1043676725, %v368_v17  ;;  %v1724_v25 = vld [vmem:[%s1861_s19 + $0x48] sm:$0xff]  }
  0x15   : > { %1597 = vmatprep.subr.bf16.mxu1 %v1794_v0  ;;  %v549_v16 = vsel %vm363_vm0, %v1721_v12, 0  ;;  %v369_v19 = vld [vmem:[%s1894_s26 + $0x4] sm:$0xf]  ;;  %v615_v23 = vsel %vm363_vm0, %v1722_v18, 0  ;;  %v1725_v26 = vld [vmem:[%s1861_s19 + $0x68] sm:$0xff]   ;;  %v618_v27 = vsel %vm363_vm0, %v1724_v25, 0 }
  0x16   : > { %v1723_v20 = vld [vmem:[%s1861_s19 + $0x60] sm:$0xff]   ;;  %v373_v22 = vmul.bf16 1043676725, %v369_v19  ;;  %v693_v28 = vsel %vm363_vm0, %v1725_v26, 0  ;;  %v1726_v29 = vld [vmem:[%s1861_s19 + $0x50] sm:$0xff]   ;;  %v1728_v33 = vld [vmem:[%s1861_s19 + $0x58] sm:$0xff]  }
  0x17   : > { %v690_v24 = vsel %vm363_vm0, %v1723_v20, 0  ;;  %v1727_v30 = vld [vmem:[%s1861_s19 + $0x70] sm:$0xff]   ;;  %v621_v31 = vsel %vm363_vm0, %v1726_v29, 0  ;;  %v1729_v34 = vld [vmem:[%s1861_s19 + $0x78] sm:$0xff]   ;;  %v624_v35 = vsel %vm363_vm0, %v1728_v33, 0  ;;  %v1971_v3 = vld [vmem:[#allocation2 + $0x8] sm:$0xff] }
  0x18   : > { %v696_v32 = vsel %vm363_vm0, %v1727_v30, 0  ;;  %v699_v36 = vsel %vm363_vm0, %v1729_v34, 0  ;;  %v370_v37 = vld [vmem:[%s1894_s26 + $0x8] sm:$0xf]  ;;  %v371_v38 = vld [vmem:[%s1894_s26 + $0xc] sm:$0xf] }
  0x19   : > { %v374_v39 = vmul.bf16 1043676725, %v370_v37  ;;  %v375_v40 = vmul.bf16 1043676725, %v371_v38  ;;  %v1730_v5 = vld [vmem:[%s1883_s22] sm:$0xff]   ;;  %v1731_v9 = vld [vmem:[%s1883_s22 + $0x8] sm:$0xff]  }
  0x1a   : > { %v1732_v10 = vld [vmem:[%s1883_s22 + $0x20] sm:$0xff]   ;;  %v1733_v11 = vld [vmem:[%s1883_s22 + $0x10] sm:$0xff]   ;;  %v1734_v12 = vld [vmem:[%s1883_s22 + $0x28] sm:$0xff]  }
  0x1b   : > { %1586 = vmatpush3.bf16.xpose.msra.mxu0 %v468_v7  ;;  %v2007_v19 = vld [vmem:[#allocation2 + $0x18] sm:$0xff] }
  0x1c   : > { %1598 = vmatpush3.bf16.xpose.msra.mxu1 %v543_v8  ;;  %1587 = vmatprep.subr.bf16.mxu0 %v1794_v0  ;;  %v1743_v41 = vld [vmem:[%s1883_s22 + $0x58] sm:$0xff]  }
  0x1d   : > { %1599 = vmatprep.subr.bf16.mxu1 %v1794_v0 }
  0x23   : > { %1588 = vmatpush3.bf16.xpose.msra.mxu0 %v471_v13  ;;  %v1735_v13 = vld [vmem:[%s1883_s22 + $0x18] sm:$0xff]  }
  0x24   : > { %1600 = vmatpush3.bf16.xpose.msra.mxu1 %v546_v14  ;;  %1589 = vmatprep.subr.bf16.mxu0 %v1794_v0  ;;  %v1736_v14 = vld [vmem:[%s1883_s22 + $0x30] sm:$0xff]  }
  0x25   : > { %1601 = vmatprep.subr.bf16.mxu1 %v1794_v0 }
  0x2b   : > { %1590 = vmatpush3.bf16.xpose.msra.mxu0 %v474_v15  ;;  %v1737_v15 = vld [vmem:[%s1883_s22 + $0x38] sm:$0xff]  }
  0x2c   : > { %1602 = vmatpush3.bf16.xpose.msra.mxu1 %v549_v16  ;;  %1607 = vmatprep.subr.bf16.mxu0 %v1794_v0  ;;  %v2002_v16 = vld [vmem:[#allocation2 + $0x10] sm:$0xff] }
  0x2d   : > { %1619 = vmatprep.subr.bf16.mxu1 %v1794_v0 }
  0x32   : > { %1592 = vmatmul.mubr.msk.bf16.vlgmr.msra.gmra.mrb[0].mxu0 %vm363_vm0, %v372_v21 }
  0x33   : > { %1608 = vmatpush3.bf16.xpose.msra.mxu0 %v615_v23  ;;  %1604 = vmatmul.mubr.msk.bf16.vlgmr.msra.gmra.mrb[0].mxu1 %vm363_vm0, %v373_v22 }
  0x34   : > { %1620 = vmatpush3.bf16.xpose.msra.mxu1 %v690_v24  ;;  %1609 = vmatprep.subr.bf16.mxu0 %v1794_v0 }
  0x35   : > { %1621 = vmatprep.subr.bf16.mxu1 %v1794_v0  ;;  %1615 = vmatprep.mubr.msk.bf16.mxu0 %vm1795_vm1, %v1794_v0 }
  0x36   : > { %1627 = vmatprep.mubr.msk.bf16.mxu1 %vm1795_vm1, %v1794_v0 }
  0x3b   : > { %1610 = vmatpush3.bf16.xpose.msra.mxu0 %v618_v27 }
  0x3c   : > { %1622 = vmatpush3.bf16.xpose.msra.mxu1 %v693_v28  ;;  %1611 = vmatprep.subr.bf16.mxu0 %v1794_v0 }
  0x3d   : > { %1623 = vmatprep.subr.bf16.mxu1 %v1794_v0 }
  0x43   : > { %1612 = vmatpush3.bf16.xpose.msra.mxu0 %v621_v31  ;;  %v1738_v31 = vld [vmem:[%s1883_s22 + $0x40] sm:$0xff]  }
  0x44   : > { %1624 = vmatpush3.bf16.xpose.msra.mxu1 %v696_v32  ;;  %1613 = vmatprep.subr.bf16.mxu0 %v1794_v0 }
  0x45   : > { %1625 = vmatprep.subr.bf16.mxu1 %v1794_v0 }
  0x4b   : > { %1614 = vmatpush3.bf16.xpose.msra.mxu0 %v624_v35  ;;  %v1739_v35 = vld [vmem:[%s1883_s22 + $0x48] sm:$0xff]  }
  0x4c   : > { %1626 = vmatpush3.bf16.xpose.msra.mxu1 %v699_v36  ;;  %1631 = vmatprep.subr.bf16.mxu0 %v1794_v0  ;;  %v1740_v36 = vld [vmem:[%s1883_s22 + $0x60] sm:$0xff]  }
  0x4d   : > { %1643 = vmatprep.subr.bf16.mxu1 %v1794_v0 }
  0x52   : > { %1616 = vmatmul.mubr.msk.bf16.vlgmr.msra.gmra.mrb[4].mxu0 %vm363_vm0, %v374_v39  ;;  %v1741_v39 = vld [vmem:[%s1883_s22 + $0x50] sm:$0xff]  }
  0x53   : > { %1628 = vmatmul.mubr.msk.bf16.vlgmr.msra.gmra.mrb[4].mxu1 %vm363_vm0, %v375_v40  ;;  %1639 = vmatprep.mubr.msk.bf16.mxu0 %vm1795_vm1, %v1794_v0  ;;  %v1742_v40 = vld [vmem:[%s1883_s22 + $0x68] sm:$0xff]  }
  0x54   : > { %1651 = vmatprep.mubr.msk.bf16.mxu1 %vm1795_vm1, %v1794_v0  ;;  %1632 = vmatpush3.bf16.msra.mxu0 %v1730_v5 }
  0x55   : > { %1633 = vmatprep.subr.bf16.mxu0 %v1794_v0  ;;  %1644 = vmatpush3.bf16.msra.mxu1 %v1732_v10 }
  0x56   : > { %1645 = vmatprep.subr.bf16.mxu1 %v1794_v0 }
  0x58   : > { %1634 = vmatpush3.bf16.msra.mxu0 %v1731_v9 }
  0x59   : > { %1635 = vmatprep.subr.bf16.mxu0 %v1794_v0  ;;  %1646 = vmatpush3.bf16.msra.mxu1 %v1734_v12  ;;  %v808_v12 = vld [vmem:[#allocation3 + $0x10] sm:$0xff] }
  0x5a   : > { %1647 = vmatprep.subr.bf16.mxu1 %v1794_v0 }
  0x5c   : > { %1636 = vmatpush3.bf16.msra.mxu0 %v1733_v11 }
  0x5d   : > { %1637 = vmatprep.subr.bf16.mxu0 %v1794_v0  ;;  %1648 = vmatpush3.bf16.msra.mxu1 %v1736_v14 }
  0x5e   : > { %1649 = vmatprep.subr.bf16.mxu1 %v1794_v0 }
  0x60   : > { %1638 = vmatpush3.bf16.msra.mxu0 %v1735_v13 }
  0x61   : > { %1655 = vmatprep.subr.bf16.mxu0 %v1794_v0  ;;  %1650 = vmatpush3.bf16.msra.mxu1 %v1737_v15  ;;  %v809_v15 = vld [vmem:[#allocation3 + $0x18] sm:$0xff] }
  0x62   : > { %1667 = vmatprep.subr.bf16.mxu1 %v1794_v0 }
 0x105   : > { %v1950_v42 = vpop.f32.mrb[0].mxu0 }
 0x106   : > { %v1593_v43 = vpop.f32.mrb[1].mxu0  ;;  %v1952_v44 = vpop.f32.mrb[0].mxu1  ;;  %v746_v45 = vsel %vm745_vm3, %v1950_v42, -inf }
 0x107   : > { %747 = vmax.xlane.f32.xlu0 %v746_v45  ;;  %v513_v46 = vpop.f32.mrb[2].mxu0  ;;  %v1605_v47 = vpop.f32.mrb[1].mxu1  ;;  %v749_v50 = vsel %vm745_vm3, %v1952_v44, -inf }
 0x108   : > { %v1594_v48 = vpop.f32.mrb[3].mxu0  ;;  %v588_v49 = vpop.f32.mrb[2].mxu1 }
 0x109   : > { %v1606_v51 = vpop.f32.mrb[3].mxu1 }
 0x10b   : > { %750 = vmax.xlane.f32.xlu0 %v749_v50 }
 0x125   : > { %v1958_v53 = vpop.f32.mrb[4].mxu0 }
 0x126   : > { %v1617_v54 = vpop.f32.mrb[5].mxu0  ;;  %v1960_v55 = vpop.f32.mrb[4].mxu1  ;;  %v752_v56 = vsel %vm745_vm3, %v1958_v53, -inf }
 0x127   : > { %v1629_v57 = vpop.f32.mrb[5].mxu1  ;;  %753 = vmax.xlane.f32.xlu1 %v752_v56  ;;  %v663_v58 = vpop.f32.mrb[6].mxu0  ;;  %v755_v61 = vsel %vm745_vm3, %v1960_v55, -inf }
 0x128   : > { %v1618_v59 = vpop.f32.mrb[7].mxu0  ;;  %v738_v60 = vpop.f32.mrb[6].mxu1 }
 0x129   : > { %v1630_v62 = vpop.f32.mrb[7].mxu1 }
 0x12b   : > { %756 = vmax.xlane.f32.xlu1 %v755_v61 }
 0x194   : > { %v748_v1 = vpop.xlane.xlu0 %747 }
 0x195   : > { %v1969_v2 = vmax.f32 %v1966_v63, %v748_v1  ;;  %v806_v1 = vld [vmem:[#allocation3] sm:$0xff] }
 0x197   : > { %v762_v4 = vsub.f32 %v1966_v63, %v1969_v2  ;;  %1143 = vst.msk [vmem:[#allocation2] sm:$0xff] %vm354_vm2, %v1969_v2  ;;  %776 = vperm.xlu0 %1712, %v1969_v2  }
 0x198   : > { %v751_v6 = vpop.xlane.xlu0 %750 }
 0x199   : > { %v1980_v7 = vmax.f32 %v1971_v3, %v751_v6 }
 0x19b   : > { %v763_v8 = vsub.f32 %v1971_v3, %v1980_v7  ;;  %1144 = vst.msk [vmem:[#allocation2 + $0x8] sm:$0xff] %vm354_vm2, %v1980_v7  ;;  %781 = vperm.xlu1 %1713, %v1980_v7   ;;  %v807_v3 = vld [vmem:[#allocation3 + $0x8] sm:$0xff] }
 0x19d   : > { %v768_v43 = vmul.f32 1.442695, %v763_v8 }
 0x1b4   : > { %v754_v17 = vpop.xlane.xlu1 %753 }
 0x1b5   : > { %v2005_v18 = vmax.f32 %v2002_v16, %v754_v17 }
 0x1b7   : > { %v764_v20 = vsub.f32 %v2002_v16, %v2005_v18  ;;  %1145 = vst.msk [vmem:[#allocation2 + $0x10] sm:$0xff] %vm354_vm2, %v2005_v18  ;;  %786 = vperm.xlu1 %1713, %v2005_v18  }
 0x1b8   : > { %v757_v21 = vpop.xlane.xlu1 %756 }
 0x1b9   : > { %v2015_v22 = vmax.f32 %v2007_v19, %v757_v21  ;;  %v770_v58 = vmul.f32 1.442695, %v764_v20 }
 0x1bb   : > { %v765_v23 = vsub.f32 %v2007_v19, %v2015_v22  ;;  %1146 = vst.msk [vmem:[#allocation2 + $0x18] sm:$0xff] %vm354_vm2, %v2015_v22  ;;  %791 = vperm.xlu1 %1713, %v2015_v22  }
 0x1bd   : > { %v772_v59 = vmul.f32 1.442695, %v765_v23 }
 0x216   : > { %v777_v24 = vpop.permute.xlu0 %776 }
 0x217   : > { %v794_v25 = vsub.f32 %v1950_v42, %v777_v24  ;;  %v1744_v42 = vld [vmem:[%s1883_s22 + $0x70] sm:$0xff]   ;;  %v835_v24 = vld [vmem:[#allocation4] sm:$0xff] }
 0x219   : > { %v798_v26 = vmul.f32 1.442695, %v794_v25 }
 0x21a   : > { %v782_v27 = vpop.permute.xlu1 %781 }
 0x21b   : > { %1746 = vpow2.f32 %v798_v26  ;;  %v795_v28 = vsub.f32 %v1952_v44, %v782_v27  ;;  %v1745_v44 = vld [vmem:[%s1883_s22 + $0x78] sm:$0xff]   ;;  %v836_v27 = vld [vmem:[#allocation4 + $0x8] sm:$0xff] }
 0x21d   : > { %v800_v29 = vmul.f32 1.442695, %v795_v28 }
 0x21f   : > { %1748 = vpow2.f32 %v800_v29 }
 0x220   : > { %1750 = vpow2.f32 %v768_v43  ;;  %v838_v43 = vld [vmem:[#allocation4 + $0x18] sm:$0xff] }
 0x225   : > { %v1747_v30 = vpop.eup %1746 }
 0x226   : > { %v814_v32 = vsel %vm745_vm3, %v1747_v30, 0.0  ;;  %v863_v33 = vpack.c.bf16 %v1747_v30, %v1747_v30 }
 0x227   : > { %815 = vadd.xlane.f32.xlu1 %v814_v32 }
 0x228   : > { %1640 = vmatmul.mubr.msk.bf16.vlgmr.msra.gmra.mrb[8].mxu0 %vm745_vm3, %v863_v33 }
 0x229   : > { %v1749_v34 = vpop.eup %1748  ;;  %1656 = vmatpush3.bf16.msra.mxu0 %v1738_v31  ;;  %1663 = vmatprep.mubr.msk.bf16.mxu0 %vm1795_vm1, %v1794_v0 }
 0x22a   : > { %v817_v37 = vsel %vm745_vm3, %v1749_v34, 0.0  ;;  %v864_v38 = vpack.c.bf16 %v1749_v34, %v1749_v34  ;;  %1657 = vmatprep.subr.bf16.mxu0 %v1794_v0  ;;  %v1751_v51 = vpop.eup %1750 }
 0x22b   : > { %818 = vadd.xlane.f32.xlu0 %v817_v37  ;;  %v811_v5 = vmul.f32 %v1751_v51, %v807_v3 }
 0x22c   : > { %1652 = vmatmul.mubr.msk.bf16.vlgmr.msra.gmra.mrb[8].mxu1 %vm745_vm3, %v864_v38 }
 0x22d   : > { %1658 = vmatpush3.bf16.msra.mxu0 %v1739_v35  ;;  %1668 = vmatpush3.bf16.msra.mxu1 %v1740_v36 }
 0x22e   : > { %1659 = vmatprep.subr.bf16.mxu0 %v1794_v0  ;;  %1669 = vmatprep.subr.bf16.mxu1 %v1794_v0 }
 0x22f   : > { %1675 = vmatprep.mubr.msk.bf16.mxu1 %vm1795_vm1, %v1794_v0 }
 0x231   : > { %1660 = vmatpush3.bf16.msra.mxu0 %v1741_v39  ;;  %1670 = vmatpush3.bf16.msra.mxu1 %v1742_v40 }
 0x232   : > { %1661 = vmatprep.subr.bf16.mxu0 %v1794_v0  ;;  %1671 = vmatprep.subr.bf16.mxu1 %v1794_v0 }
 0x235   : > { %1662 = vmatpush3.bf16.msra.mxu0 %v1743_v41  ;;  %1672 = vmatpush3.bf16.msra.mxu1 %v1744_v42  ;;  %v837_v41 = vld [vmem:[#allocation4 + $0x10] sm:$0xff] }
 0x236   : > { %v787_v45 = vpop.permute.xlu1 %786  ;;  %1673 = vmatprep.subr.bf16.mxu1 %v1794_v0 }
 0x237   : > { %v796_v46 = vsub.f32 %v1958_v53, %v787_v45 }
 0x239   : > { %v802_v47 = vmul.f32 1.442695, %v796_v46  ;;  %1674 = vmatpush3.bf16.msra.mxu1 %v1745_v44 }
 0x23a   : > { %v792_v48 = vpop.permute.xlu1 %791 }
 0x23b   : > { %1752 = vpow2.f32 %v802_v47  ;;  %v797_v49 = vsub.f32 %v1960_v55, %v792_v48  ;;  %v766_v55 = vmul.f32 1.442695, %v762_v4 }
 0x23d   : > { %v804_v50 = vmul.f32 1.442695, %v797_v49 }
 0x23f   : > { %1754 = vpow2.f32 %v804_v50 }
 0x240   : > { %1756 = vpow2.f32 %v766_v55 }
 0x241   : > { %846 = vperm.xlu0 %1712, %v1751_v51   ;;  %1758 = vpow2.f32 %v770_v58  ;;  %v1191_v58 = vlaneseq }
 0x242   : > { %1760 = vpow2.f32 %v772_v59 }
 0x245   : > { %v1753_v52 = vpop.eup %1752 }
 0x246   : > { %v820_v54 = vsel %vm745_vm3, %v1753_v52, 0.0  ;;  %v865_v56 = vpack.c.bf16 %v1753_v52, %v1753_v52 }
 0x247   : > { %821 = vadd.xlane.f32.xlu1 %v820_v54 }
 0x248   : > { %1664 = vmatmul.mubr.msk.bf16.vlgmr.msra.gmra.mrb[12].mxu0 %vm745_vm3, %v865_v56 }
 0x249   : > { %v1755_v0 = vpop.eup %1754 }
 0x24a   : > { %v823_v53 = vsel %vm745_vm3, %v1755_v0, 0.0  ;;  %v866_v57 = vpack.c.bf16 %v1755_v0, %v1755_v0  ;;  %v1757_v60 = vpop.eup %1756 }
 0x24b   : > { %824 = vadd.xlane.f32.xlu1 %v823_v53  ;;  %v1759_v61 = vpop.eup %1758  ;;  %v810_v63 = vmul.f32 %v1757_v60, %v806_v1 }
 0x24c   : > { %1676 = vmatmul.mubr.msk.bf16.vlgmr.msra.gmra.mrb[12].mxu1 %vm745_vm3, %v866_v57  ;;  %v1761_v62 = vpop.eup %1760  ;;  %v812_v13 = vmul.f32 %v1759_v61, %v808_v12  ;;  %v1798_v57 = vmov 1983009808  }
 0x24d   : > { %v813_v17 = vmul.f32 %v1761_v62, %v809_v15  ;;  %v1189_v55 = vunpack.c.l.s4 %v1798_v57 }
 0x25c   : > { %841 = vperm.xlu1 %1713, %v1757_v60   ;;  %v1190_v60 = vunpack.c.0.s8 %v1189_v55 }
 0x260   : > { %851 = vperm.xlu1 %1713, %v1759_v61   ;;  %v1192_v61 = vshrl.u32 %v1191_v58, 7 }
 0x264   : > { %856 = vperm.xlu1 %1713, %v1761_v62  }
 0x2b4   : > { %v816_v2 = vpop.xlane.xlu1 %815 }
 0x2b5   : > { %v826_v4 = vadd.f32 %v816_v2, %v810_v63  ;;  %v1799_v63 = vmov 1934713408  }
 0x2b6   : > { %v1221_v2 = vunpack.c.l.s4 %v1799_v63 }
 0x2b7   : > { %831 = vst.msk [vmem:[#allocation3] sm:$0xff] %vm354_vm2, %v826_v4 }
 0x2b8   : > { %v819_v6 = vpop.xlane.xlu0 %818 }
 0x2b9   : > { %v827_v7 = vadd.f32 %v819_v6, %v811_v5 }
 0x2bb   : > { %832 = vst.msk [vmem:[#allocation3 + $0x8] sm:$0xff] %vm354_vm2, %v827_v7  ;;  %v1193_v7 = vsub.s32 %v1190_v60, %v1192_v61 }
 0x2be   : > { %v1150_v8 = vld [vmem:[#allocation3] sm:$0xff] }
 0x2bf   : > { %1762 = vrcp.f32 %v1150_v8  ;;  %v1222_v8 = vunpack.c.0.s8 %v1221_v2 }
 0x2c0   : > { %v847_v28 = vpop.permute.xlu0 %846 }
 0x2c1   : > { %v860_v33 = vmul.f32 %v847_v28, %v836_v27 }
 0x2c2   : > { %v1151_v9 = vld [vmem:[#allocation3 + $0x8] sm:$0xff] }
 0x2c3   : > { %1764 = vrcp.f32 %v1151_v9 }
 0x2c9   : > { %v1763_v10 = vpop.eup %1762 }
 0x2ca   : > { %1164 = vperm.xlu1 %1713, %v1763_v10  }
 0x2cd   : > { %v1765_v11 = vpop.eup %1764 }
 0x2ce   : > { %1169 = vperm.xlu0 %1712, %v1765_v11  }
 0x2d4   : > { %v822_v14 = vpop.xlane.xlu1 %821 }
 0x2d5   : > { %v828_v16 = vadd.f32 %v822_v14, %v812_v13 }
 0x2d7   : > { %833 = vst.msk [vmem:[#allocation3 + $0x10] sm:$0xff] %vm354_vm2, %v828_v16 }
 0x2d8   : > { %v825_v18 = vpop.xlane.xlu1 %824 }
 0x2d9   : > { %v829_v19 = vadd.f32 %v825_v18, %v813_v17  ;;  %v1225_v17 = vsub.s32 %v1222_v8, %v1192_v61 }
 0x2db   : > { %834 = vst.msk [vmem:[#allocation3 + $0x18] sm:$0xff] %vm354_vm2, %v829_v19 }
 0x2dc   : > { %v842_v25 = vpop.permute.xlu1 %841 }
 0x2dd   : > { %v859_v26 = vmul.f32 %v842_v25, %v835_v24 }
 0x2de   : > { %v1152_v20 = vld [vmem:[#allocation3 + $0x10] sm:$0xff] }
 0x2df   : > { %1766 = vrcp.f32 %v1152_v20 }
 0x2e0   : > { %v852_v40 = vpop.permute.xlu1 %851 }
 0x2e1   : > { %v861_v42 = vmul.f32 %v852_v40, %v837_v41 }
 0x2e2   : > { %v1153_v21 = vld [vmem:[#allocation3 + $0x18] sm:$0xff] }
 0x2e3   : > { %1768 = vrcp.f32 %v1153_v21 }
 0x2e4   : > { %v857_v44 = vpop.permute.xlu1 %856 }
 0x2e5   : > { %v862_v49 = vmul.f32 %v857_v44, %v838_v43 }
 0x2e9   : > { %v1767_v22 = vpop.eup %1766 }
 0x2ea   : > { %1174 = vperm.xlu1 %1713, %v1767_v22  }
 0x2ed   : > { %v1769_v23 = vpop.eup %1768 }
 0x2ee   : > { %1179 = vperm.xlu0 %1712, %v1769_v23  }
 0x2fb   : > { %v928_v29 = vpop.f32.mrb[8].mxu0 }
 0x2fc   : > { %v1135_v30 = vadd.f32 %v928_v29, %v859_v26  ;;  %v1641_v31 = vpop.f32.mrb[9].mxu0 }
 0x2fd   : > { %v931_v32 = vpop.f32.mrb[10].mxu0 }
 0x2fe   : > { %1139 = vst.msk [vmem:[#allocation4] sm:$0xff] %vm363_vm0, %v1135_v30  ;;  %v1642_v34 = vpop.f32.mrb[11].mxu0 }
 0x2ff   : > { %v995_v35 = vpop.f32.mrb[8].mxu1 }
 0x300   : > { %v1136_v36 = vadd.f32 %v995_v35, %v860_v33  ;;  %v1653_v37 = vpop.f32.mrb[9].mxu1 }
 0x301   : > { %v998_v38 = vpop.f32.mrb[10].mxu1 }
 0x302   : > { %1140 = vst.msk [vmem:[#allocation4 + $0x8] sm:$0xff] %vm363_vm0, %v1136_v36  ;;  %v1654_v39 = vpop.f32.mrb[11].mxu1 }
 0x305   : > { %v1158_v4 = vld [vmem:[#allocation4] sm:$0xff] }
 0x309   : > { %v1159_v6 = vld [vmem:[#allocation4 + $0x8] sm:$0xff] }
 0x31b   : > { %v1062_v45 = vpop.f32.mrb[12].mxu0 }
 0x31c   : > { %v1137_v46 = vadd.f32 %v1062_v45, %v861_v42  ;;  %v1665_v47 = vpop.f32.mrb[13].mxu0 }
 0x31d   : > { %v1065_v48 = vpop.f32.mrb[14].mxu0 }
 0x31e   : > { %1141 = vst.msk [vmem:[#allocation4 + $0x10] sm:$0xff] %vm363_vm0, %v1137_v46  ;;  %v1666_v50 = vpop.f32.mrb[15].mxu0 }
 0x31f   : > { %v1129_v51 = vpop.f32.mrb[12].mxu1 }
 0x320   : > { %v1138_v52 = vadd.f32 %v1129_v51, %v862_v49  ;;  %v1677_v54 = vpop.f32.mrb[13].mxu1 }
 0x321   : > { %v1132_v56 = vpop.f32.mrb[14].mxu1 }
 0x322   : > { %1142 = vst.msk [vmem:[#allocation4 + $0x18] sm:$0xff] %vm363_vm0, %v1138_v52  ;;  %v1678_v0 = vpop.f32.mrb[15].mxu1 }
 0x325   : > { %v1160_v1 = vld [vmem:[#allocation4 + $0x10] sm:$0xff] }
 0x329   : > { %v1161_v10 = vld [vmem:[#allocation4 + $0x18] sm:$0xff] }
 0x349   : > { %v1165_v53 = vpop.permute.xlu1 %1164 }
 0x34a   : > { %v1182_v5 = vmul.f32 %v1165_v53, %v1158_v4 }
 0x34d   : > { %v1170_v59 = vpop.permute.xlu0 %1169 }
 0x34e   : > { %v1183_v11 = vmul.f32 %v1170_v59, %v1159_v6 }
 0x369   : > { %v1175_v62 = vpop.permute.xlu1 %1174 }
 0x36a   : > { %v1184_v3 = vmul.f32 %v1175_v62, %v1160_v1 }
 0x36c   : > { %v1186_v12 = vcombine.low %v1182_v5, %v1184_v3  ;;  %v1187_v13 = vcombine.high %v1182_v5, %v1184_v3 }
 0x36d   : > { %v1180_v9 = vpop.permute.xlu0 %1179 }
 0x36e   : > { %v1185_v14 = vmul.f32 %v1180_v9, %v1161_v10  ;;  %v1194_v18 = vrot.slane %v1186_v12, %v1193_v7  ;;  %v1201_v19 = vrot.slane %v1187_v13, %v1193_v7 }
 0x370   : > { %v1202_v15 = vcombine.low %v1183_v11, %v1185_v14  ;;  %v1203_v16 = vcombine.high %v1183_v11, %v1185_v14 }
 0x372   : > { %v1210_v20 = vrot.slane %v1202_v15, %v1193_v7  ;;  %v1217_v21 = vrot.slane %v1203_v16, %v1193_v7 }
 0x374   : > { %v1218_v22 = vcombine.low %v1194_v18, %v1210_v20  ;;  %v1219_v23 = vcombine.high %v1194_v18, %v1210_v20  ;;  %v1234_v24 = vcombine.low %v1201_v19, %v1217_v21  ;;  %v1235_v25 = vcombine.high %v1201_v19, %v1217_v21 }
 0x376   : > { %v1226_v26 = vrot.slane %v1218_v22, %v1225_v17  ;;  %v1233_v27 = vrot.slane %v1219_v23, %v1225_v17  ;;  %v1242_v28 = vrot.slane %v1234_v24, %v1225_v17  ;;  %v1249_v29 = vrot.slane %v1235_v25, %v1225_v17 }
 0x378   : > { %v1254_v30 = vcombine.low %v1226_v26, %v1233_v27  ;;  %v1536_v31 = vcombine.high %v1226_v26, %v1233_v27  ;;  %v1270_v32 = vcombine.low %v1242_v28, %v1249_v29  ;;  %v1537_v33 = vcombine.high %v1242_v28, %v1249_v29 }
 0x37a   : > { %v1261_v34 = vrot.slane %v1254_v30, %v1193_v7  ;;  %v1269_v35 = vrot.slane %v1536_v31, %v1193_v7  ;;  %v1277_v36 = vrot.slane %v1270_v32, %v1193_v7  ;;  %v1285_v37 = vrot.slane %v1537_v33, %v1193_v7 }
 0x37c   : > { %v1287_v38 = vcombine.high %v1261_v34, %v1269_v35  ;;  %v1303_v39 = vcombine.high %v1277_v36, %v1285_v37  ;;  %v1286_v40 = vcombine.low %v1261_v34, %v1269_v35  ;;  %v1302_v41 = vcombine.low %v1277_v36, %v1285_v37 }
 0x37e   : > { %v1301_v42 = vrot.slane %v1287_v38, %v1225_v17  ;;  %v1317_v43 = vrot.slane %v1303_v39, %v1225_v17  ;;  %v1294_v44 = vrot.slane %v1286_v40, %v1225_v17  ;;  %v1310_v45 = vrot.slane %v1302_v41, %v1225_v17 }
 0x380   : > { %v1320_v46 = vcombine.low %v1301_v42, %v1317_v43  ;;  %v1319_v47 = vcombine.high %v1294_v44, %v1310_v45  ;;  %v1318_v48 = vcombine.low %v1294_v44, %v1310_v45  ;;  %v1321_v49 = vcombine.high %v1301_v42, %v1317_v43 }
 0x382   : > { %1327 = vrot.lane.b32.xlu0 %v1320_v46, %s1800_s27  ;;  %1323 = vrot.lane.b32.xlu1 %v1319_v47, %s1801_s28 }
 0x386   : > { %1331 = vrot.lane.b32.xlu1 %v1321_v49, %s1802_s29 }
 0x3f4   : > { %v1324_v50 = vpop.permute.xlu1 %1323  ;;  %v1328_v51 = vpop.permute.xlu0 %1327 }
 0x3f5   : > { %v1334_v52 = vsel %vm363_vm0, %v1318_v48, %v1324_v50 }
 0x3f6   : > { %v1335_v56 = vsel %vm745_vm3, %v1334_v52, %v1328_v51 }
 0x3f8   : > { %v1332_v54 = vpop.permute.xlu1 %1331 }
 0x3f9   : > { %v1337_v0 = vsel %vm1336_vm4, %v1335_v56, %v1332_v54 }
 0x3fa   : > { %v1338_v53 = vpack.c.bf16 %v1337_v0, %v1337_v0 }
 0x3fc   : > { %1339 = vst [vmem:[%s347_s6] sm:$0xf] %v1338_v53 }
 0x3fd PF: > { %s13_s14 = sadd.s32 1, %s1792_s14   ;;  %s2091_s12 = smov %s1788_s13 }
 0x3fe   : > { %p10_p5 = scmp.ge.s32.totalorder %s13_s14, 4   ;;  %s2092_s13 = smov %s2094_s15 }
 0x400   :  { %12 = sbr.rel (!%p10_p5) target bundleno = 2 (0x2), region = 76 }

</bundles_post_ra>
